<compile_context>
chip_gen: v6e
topology: v6e:2x2x1
jax: 0.10.0
libtpu: 0.0.40
codegen_flags: <defaults>
</compile_context>

<pallas_src>
import jax
import jax.numpy as jnp
from jax.experimental import pallas as pl
from jax.experimental.pallas import tpu as pltpu


def attention_kernel(x1_ref, x2_ref, w1_ref, b1_ref, w2_ref, b2_ref,
                     wa_ref, ba_ref, att_out_ref, alpha_ref):
    # One batch tile: x1 (Bt, D1) bf16, x2 (Bt, S, D2) bf16
    #   -> att_out (Bt, D2) f32, alpha (Bt, S) f32
    x1 = x1_ref[...]                        # (Bt, D1) bf16
    x2 = x2_ref[...]                        # (Bt, S, D2) bf16
    Bt, S, D2 = x2.shape

    # f32 copy of the tile: reused by the weighted sum, and gives the
    # known-good f32 relayout path for the flatten below.
    x2_f32 = x2.astype(jnp.float32)

    # enc_input1 = Linear1(input1) -> (Bt, H)        [MXU: bf16 in, f32 acc]
    e1 = jnp.dot(x1, w1_ref[...], preferred_element_type=jnp.float32) + b1_ref[...]

    # enc_input2 = Linear2(input2) -> (Bt, S, H)     [MXU: one flattened matmul]
    # Flatten on the f32 value (proven relayout path), recast to bf16 so the
    # MXU still gets bf16 operands; accumulate in f32.
    x2_flat = x2_f32.reshape(Bt * S, D2).astype(jnp.bfloat16)
    e2 = jnp.dot(x2_flat, w2_ref[...],
                 preferred_element_type=jnp.float32) + b2_ref[...]
    H = e2.shape[-1]
    e2 = e2.reshape(Bt, S, H)

    # relu(enc_input2 + enc_input1.unsqueeze(1))     [VPU, f32]
    h = jnp.maximum(e2 + e1[:, None, :], 0.0)        # (Bt, S, H)

    # full_att2_1(h).squeeze(2) -> (Bt, S): VPU multiply + XLU lane reduce
    # instead of an N=1 MXU matmul (which would waste 127/255 output columns).
    att = jnp.sum(h * wa_ref[...], axis=-1) + ba_ref[0, 0]     # (Bt, S)

    # Exact softmax over the sequence axis (dim=1).  alpha is a returned
    # output and feeds the weighted sum, so no approximate reciprocal here.
    m = jnp.max(att, axis=1, keepdims=True)
    p = jnp.exp(att - m)
    alpha = p / jnp.sum(p, axis=1, keepdims=True)               # (Bt, S) f32
    alpha_ref[...] = alpha.astype(alpha_ref.dtype)

    # att_input2 = (input2 * alpha.unsqueeze(2)).sum(dim=1) -> (Bt, D2)
    # VPU multiply + XLU sublane reduce: rides slots that are idle while the
    # MXU does the Linear2 matmul (an M=1 MXU matvec per row would not).
    att_in2 = jnp.sum(x2_f32 * alpha[:, :, None], axis=1)
    att_out_ref[...] = att_in2.astype(att_out_ref.dtype)


def _vmem_budget_bytes():
    """Generation-aware (tile_budget, vmem_limit).  128 MiB parts (v5e/v6e) get
    a much larger tile budget than v7x (64 MiB VMEM per TensorCore)."""
    cap = 64 << 20  # conservative fallback: assume a 64 MiB (v7x-class) part
    try:
        cap = int(pltpu.get_tpu_info().vmem_capacity_bytes)
    except Exception:
        pass
    if cap >= (100 << 20):          # v5e / v6e: 128 MiB VMEM
        return 80 << 20, 100 << 20
    return 28 << 20, 48 << 20       # v7x: leave headroom for compiler scratch


def _pick_batch_tile(B, S, D1, D2, H, budget_bytes):
    """Largest batch tile (multiple of 8 dividing B, or B itself) whose
    double-buffered I/O + f32 intermediates fit the budget; prefers >= 2 grid
    steps so v7x's two TensorCores both get work and the pipeline can overlap."""
    BF16, F32 = 2, 4
    # Resident weights (double-buffered by the pipeline) + compiler headroom.
    fixed = 2 * (BF16 * (D1 + D2) * H + F32 * (2 * H)) + (2 << 20)

    def live_bytes(bt):
        io = 2 * (BF16 * bt * (D1 + S * D2)      # x1, x2 (bf16, double-buffered)
                  + F32 * bt * (D2 + S))          # att_out, alpha (f32, 2 buffers)
        inter = F32 * bt * S * (D2 + 3 * H)       # f32 x2 copy + e2/h/score work set
        return fixed + io + inter

    cands = [c for c in range(B, 0, -1) if B % c == 0 and (c % 8 == 0 or c == B)]
    fits = [c for c in cands if live_bytes(c) <= budget_bytes]
    if not fits:
        return cands[-1]   # smallest legal tile (pathological B may still overshoot)
    multi = [c for c in fits if c <= B // 2]      # prefer grid >= 2 (v7x TC sharding)
    return multi[0] if multi else fits[0]


def attention_pallas(x1, x2, w1, b1, w2, b2, wa, ba):
    B, S, D2 = x2.shape
    D1 = x1.shape[1]
    H = w1.shape[1]

    tile_budget, vmem_limit = _vmem_budget_bytes()
    bt = _pick_batch_tile(B, S, D1, D2, H, tile_budget)
    grid = (B // bt,)

    # bf16 MXU / HBM inputs; f32 accumulation and softmax stay inside the kernel.
    x1b = x1.astype(jnp.bfloat16)
    x2b = x2.astype(jnp.bfloat16)
    w1b = w1.astype(jnp.bfloat16)
    w2b = w2.astype(jnp.bfloat16)
    wa_row = wa.reshape(1, H).astype(jnp.float32)   # lane-major row for the VPU broadcast
    b1r = b1.reshape(1, H).astype(jnp.float32)
    b2r = b2.reshape(1, H).astype(jnp.float32)
    ba2 = ba.reshape(1, 1).astype(jnp.float32)

    return pl.pallas_call(
        attention_kernel,
        out_shape=(
            jax.ShapeDtypeStruct((B, D2), x2.dtype),     # att_input2
            jax.ShapeDtypeStruct((B, S), jnp.float32),   # alpha
        ),
        grid=grid,
        in_specs=[
            pl.BlockSpec((bt, D1), lambda i: (i, 0)),             # x1: tiled over B
            pl.BlockSpec((bt, S, D2), lambda i: (i, 0, 0)),       # x2: tiled over B
            pl.BlockSpec((D1, H), lambda i: (0, 0)),              # w1: VMEM-resident
            pl.BlockSpec((1, H), lambda i: (0, 0)),               # b1: resident
            pl.BlockSpec((D2, H), lambda i: (0, 0)),              # w2: resident
            pl.BlockSpec((1, H), lambda i: (0, 0)),               # b2: resident
            pl.BlockSpec((1, H), lambda i: (0, 0)),               # wa row: resident
            pl.BlockSpec(memory_space=pltpu.MemorySpace.SMEM),    # ba: scalar in SMEM
        ],
        out_specs=(
            pl.BlockSpec((bt, D2), lambda i: (i, 0)),
            pl.BlockSpec((bt, S), lambda i: (i, 0)),
        ),
        compiler_params=pltpu.CompilerParams(
            dimension_semantics=("parallel",),   # shard batch tiles over v7x's 2 TCs
            vmem_limit_bytes=vmem_limit,
        ),
    )(x1b, x2b, w1b, b1r, w2b, b2r, wa_row, ba2)


def attention_ref(x1, x2, w1, b1, w2, b2, wa, ba):
    e1 = x1 @ w1 + b1
    e2 = x2 @ w2 + b2
    h = jnp.maximum(e2 + e1[:, None, :], 0.0)
    att = (h @ wa)[..., 0] + ba[0, 0]
    alpha = jax.nn.softmax(att, axis=1)
    att_in2 = jnp.sum(x2 * alpha[:, :, None], axis=1)
    return att_in2, alpha


if __name__ == "__main__":
    key = jax.random.PRNGKey(0)
    B, S = 2, 8
    D1, D2, H = 16, 16, 32  # input1_dim, input2_dim, hidden_dim

    ks = jax.random.split(key, 8)
    x1 = jax.random.normal(ks[0], (B, D1), dtype=jnp.float32)
    x2 = jax.random.normal(ks[1], (B, S, D2), dtype=jnp.float32)

    # Deterministic parameter init (Linear weights stored as (in, out)).
    w1 = jax.random.normal(ks[2], (D1, H), dtype=jnp.float32) * 0.1
    b1 = jax.random.normal(ks[3], (1, H), dtype=jnp.float32) * 0.1
    w2 = jax.random.normal(ks[4], (D2, H), dtype=jnp.float32) * 0.1
    b2 = jax.random.normal(ks[5], (1, H), dtype=jnp.float32) * 0.1
    wa = jax.random.normal(ks[6], (H, 1), dtype=jnp.float32) * 0.1
    ba = jax.random.normal(ks[7], (1, 1), dtype=jnp.float32) * 0.1

    att_out, alpha = attention_pallas(x1, x2, w1, b1, w2, b2, wa, ba)
    jax.block_until_ready((att_out, alpha))
    assert att_out.shape == (B, D2) and alpha.shape == (B, S)

    # (1) Tight check against a reference fed the same bf16-rounded inputs
    #     (isolates kernel logic from the intentional bf16 input quantization).
    rq = lambda a: a.astype(jnp.bfloat16).astype(jnp.float32)
    ref_out_q, ref_alpha_q = attention_ref(rq(x1), rq(x2), rq(w1), b1, rq(w2), b2, wa, ba)
    assert jnp.allclose(alpha, ref_alpha_q, atol=2e-3, rtol=2e-3), \
        float(jnp.max(jnp.abs(alpha - ref_alpha_q)))
    assert jnp.allclose(att_out, ref_out_q, atol=2e-3, rtol=2e-3), \
        float(jnp.max(jnp.abs(att_out - ref_out_q)))

    # (2) Looser sanity check against the pure-f32 reference (bounds the
    #     error introduced by the bf16 input cast).
    ref_out, ref_alpha = attention_ref(x1, x2, w1, b1, w2, b2, wa, ba)
    assert jnp.allclose(alpha, ref_alpha, atol=5e-2, rtol=5e-2), \
        float(jnp.max(jnp.abs(alpha - ref_alpha)))
    assert jnp.allclose(att_out, ref_out, atol=5e-2, rtol=5e-2), \
        float(jnp.max(jnp.abs(att_out - ref_out)))

    # Softmax rows normalize exactly (exact divide, no approx reciprocal).
    assert jnp.allclose(jnp.sum(alpha, axis=1), 1.0, atol=1e-5)

    print("KERNEL_OK")
</pallas_src>

<mosaic_0001>
module attributes {stable_mosaic.version = 11 : i64} {
  func.func @attention_kernel(%arg0: i32, %arg1: memref<2x16xbf16, #tpu.memory_space<vmem>>, %arg2: memref<2x8x16xbf16, #tpu.memory_space<vmem>>, %arg3: memref<16x32xbf16, #tpu.memory_space<vmem>>, %arg4: memref<1x32xf32, #tpu.memory_space<vmem>>, %arg5: memref<16x32xbf16, #tpu.memory_space<vmem>>, %arg6: memref<1x32xf32, #tpu.memory_space<vmem>>, %arg7: memref<1x32xf32, #tpu.memory_space<vmem>>, %arg8: memref<1x1xf32, #tpu.memory_space<smem>>, %arg9: memref<2x16xf32, #tpu.memory_space<vmem>>, %arg10: memref<2x8xf32, #tpu.memory_space<vmem>>) attributes {dimension_semantics = [#tpu.dimension_semantics<parallel>], iteration_bounds = array<i64: 1>, scalar_prefetch = 0 : i64, scratch_operands = 0 : i64, tpu.core_type = #tpu.core_type<tc>, window_params = [{transform_indices = @transform_0, window_bounds = array<i64: 2, 16>}, {transform_indices = @transform_1, window_bounds = array<i64: 2, 8, 16>}, {pipeline_mode = #tpu.pipeline_mode<synchronous>, transform_indices = @transform_2, window_bounds = array<i64: 16, 32>}, {pipeline_mode = #tpu.pipeline_mode<synchronous>, transform_indices = @transform_3, window_bounds = array<i64: 1, 32>}, {pipeline_mode = #tpu.pipeline_mode<synchronous>, transform_indices = @transform_4, window_bounds = array<i64: 16, 32>}, {pipeline_mode = #tpu.pipeline_mode<synchronous>, transform_indices = @transform_5, window_bounds = array<i64: 1, 32>}, {pipeline_mode = #tpu.pipeline_mode<synchronous>, transform_indices = @transform_6, window_bounds = array<i64: 1, 32>}, {transform_indices = @transform_7, window_bounds = array<i64: 1, 1>}, {transform_indices = @transform_8, window_bounds = array<i64: 2, 16>}, {transform_indices = @transform_9, window_bounds = array<i64: 2, 8>}]} {
    %c0 = arith.constant 0 : index
    %c0_0 = arith.constant 0 : index
    %0 = vector.load %arg1[%c0, %c0_0] : memref<2x16xbf16, #tpu.memory_space<vmem>>, vector<2x16xbf16>
    %c0_1 = arith.constant 0 : index
    %c0_2 = arith.constant 0 : index
    %c0_3 = arith.constant 0 : index
    %1 = vector.load %arg2[%c0_1, %c0_2, %c0_3] : memref<2x8x16xbf16, #tpu.memory_space<vmem>>, vector<2x8x16xbf16>
    %2 = arith.extf %1 : vector<2x8x16xbf16> to vector<2x8x16xf32>
    %c0_4 = arith.constant 0 : index
    %c0_5 = arith.constant 0 : index
    %3 = vector.load %arg3[%c0_4, %c0_5] : memref<16x32xbf16, #tpu.memory_space<vmem>>, vector<16x32xbf16>
    %cst = arith.constant dense<0.000000e+00> : vector<2x32xf32>
    %4 = tpu.matmul %0, %3, %cst {dimension_numbers = #tpu.dot_dimension_numbers<[1], [0], [0], [1], [0, 0, 1, 1], [], []>} : vector<2x16xbf16>, vector<16x32xbf16>, vector<2x32xf32> -> vector<2x32xf32>
    %c0_6 = arith.constant 0 : index
    %c0_7 = arith.constant 0 : index
    %5 = vector.load %arg4[%c0_6, %c0_7] : memref<1x32xf32, #tpu.memory_space<vmem>>, vector<1x32xf32>
    %6 = vector.broadcast %5 : vector<1x32xf32> to vector<2x32xf32>
    %7 = arith.addf %4, %6 : vector<2x32xf32>
    %8 = vector.shape_cast %2 : vector<2x8x16xf32> to vector<16x16xf32>
    %9 = arith.truncf %8 : vector<16x16xf32> to vector<16x16xbf16>
    %c0_8 = arith.constant 0 : index
    %c0_9 = arith.constant 0 : index
    %10 = vector.load %arg5[%c0_8, %c0_9] : memref<16x32xbf16, #tpu.memory_space<vmem>>, vector<16x32xbf16>
    %cst_10 = arith.constant dense<0.000000e+00> : vector<16x32xf32>
    %11 = tpu.matmul %9, %10, %cst_10 {dimension_numbers = #tpu.dot_dimension_numbers<[1], [0], [0], [1], [0, 0, 1, 1], [], []>} : vector<16x16xbf16>, vector<16x32xbf16>, vector<16x32xf32> -> vector<16x32xf32>
    %c0_11 = arith.constant 0 : index
    %c0_12 = arith.constant 0 : index
    %12 = vector.load %arg6[%c0_11, %c0_12] : memref<1x32xf32, #tpu.memory_space<vmem>>, vector<1x32xf32>
    %13 = vector.broadcast %12 : vector<1x32xf32> to vector<16x32xf32>
    %14 = arith.addf %11, %13 : vector<16x32xf32>
    %15 = vector.shape_cast %14 : vector<16x32xf32> to vector<2x8x32xf32>
    %16 = vector.shape_cast %7 : vector<2x32xf32> to vector<2x1x32xf32>
    %17 = vector.broadcast %16 : vector<2x1x32xf32> to vector<2x8x32xf32>
    %18 = arith.addf %15, %17 : vector<2x8x32xf32>
    %cst_13 = arith.constant 0.000000e+00 : f32
    %19 = vector.broadcast %cst_13 : f32 to vector<2x8x32xf32>
    %20 = arith.maximumf %18, %19 : vector<2x8x32xf32>
    %c0_14 = arith.constant 0 : index
    %c0_15 = arith.constant 0 : index
    %21 = vector.load %arg7[%c0_14, %c0_15] : memref<1x32xf32, #tpu.memory_space<vmem>>, vector<1x32xf32>
    %22 = vector.shape_cast %21 : vector<1x32xf32> to vector<1x1x32xf32>
    %23 = vector.broadcast %22 : vector<1x1x32xf32> to vector<2x8x32xf32>
    %24 = arith.mulf %20, %23 : vector<2x8x32xf32>
    %cst_16 = arith.constant dense<0.000000e+00> : vector<2x8xf32>
    %25 = vector.multi_reduction <add>, %24, %cst_16 [2] : vector<2x8x32xf32> to vector<2x8xf32>
    %c0_17 = arith.constant 0 : index
    %c0_18 = arith.constant 0 : index
    %26 = memref.load %arg8[%c0_17, %c0_18] : memref<1x1xf32, #tpu.memory_space<smem>>
    %27 = vector.broadcast %26 : f32 to vector<2x8xf32>
    %28 = arith.addf %25, %27 : vector<2x8xf32>
    %cst_19 = arith.constant dense<0xFF800000> : vector<2xf32>
    %29 = vector.multi_reduction <maximumf>, %28, %cst_19 [1] : vector<2x8xf32> to vector<2xf32>
    %30 = vector.shape_cast %29 : vector<2xf32> to vector<2x1xf32>
    %31 = vector.broadcast %30 : vector<2x1xf32> to vector<2x8xf32>
    %32 = arith.subf %28, %31 : vector<2x8xf32>
    %33 = math.exp %32 : vector<2x8xf32>
    %cst_20 = arith.constant dense<0.000000e+00> : vector<2xf32>
    %34 = vector.multi_reduction <add>, %33, %cst_20 [1] : vector<2x8xf32> to vector<2xf32>
    %35 = vector.shape_cast %34 : vector<2xf32> to vector<2x1xf32>
    %36 = vector.broadcast %35 : vector<2x1xf32> to vector<2x8xf32>
    %37 = arith.divf %33, %36 : vector<2x8xf32>
    %c0_21 = arith.constant 0 : index
    %c0_22 = arith.constant 0 : index
    %38 = vector.load %arg10[%c0_21, %c0_22] : memref<2x8xf32, #tpu.memory_space<vmem>>, vector<2x8xf32>
    tpu.vector_store %arg10[%c0_21, %c0_22], %37 {strides = array<i32>} : memref<2x8xf32, #tpu.memory_space<vmem>>, vector<2x8xf32>,
    %39 = vector.shape_cast %37 : vector<2x8xf32> to vector<2x8x1xf32>
    %40 = vector.broadcast %39 : vector<2x8x1xf32> to vector<2x8x16xf32>
    %41 = arith.mulf %2, %40 : vector<2x8x16xf32>
    %cst_23 = arith.constant dense<0.000000e+00> : vector<2x16xf32>
    %42 = vector.multi_reduction <add>, %41, %cst_23 [1] : vector<2x8x16xf32> to vector<2x16xf32>
    %c0_24 = arith.constant 0 : index
    %c0_25 = arith.constant 0 : index
    %43 = vector.load %arg9[%c0_24, %c0_25] : memref<2x16xf32, #tpu.memory_space<vmem>>, vector<2x16xf32>
    tpu.vector_store %arg9[%c0_24, %c0_25], %42 {strides = array<i32>} : memref<2x16xf32, #tpu.memory_space<vmem>>, vector<2x16xf32>,
    return
  }
  func.func @transform_0(%arg0: i32) -> (i32, i32) {
    %c0_i32 = arith.constant 0 : i32
    %c0_i32_0 = arith.constant 0 : i32
    return %arg0, %c0_i32 : i32, i32
  }
  func.func @transform_1(%arg0: i32) -> (i32, i32, i32) {
    %c0_i32 = arith.constant 0 : i32
    %c0_i32_0 = arith.constant 0 : i32
    %c0_i32_1 = arith.constant 0 : i32
    return %arg0, %c0_i32, %c0_i32_0 : i32, i32, i32
  }
  func.func @transform_2(%arg0: i32) -> (i32, i32) {
    %c0_i32 = arith.constant 0 : i32
    %c0_i32_0 = arith.constant 0 : i32
    %c0_i32_1 = arith.constant 0 : i32
    return %c0_i32, %c0_i32_0 : i32, i32
  }
  func.func @transform_3(%arg0: i32) -> (i32, i32) {
    %c0_i32 = arith.constant 0 : i32
    %c0_i32_0 = arith.constant 0 : i32
    %c0_i32_1 = arith.constant 0 : i32
    return %c0_i32, %c0_i32_0 : i32, i32
  }
  func.func @transform_4(%arg0: i32) -> (i32, i32) {
    %c0_i32 = arith.constant 0 : i32
    %c0_i32_0 = arith.constant 0 : i32
    %c0_i32_1 = arith.constant 0 : i32
    return %c0_i32, %c0_i32_0 : i32, i32
  }
  func.func @transform_5(%arg0: i32) -> (i32, i32) {
    %c0_i32 = arith.constant 0 : i32
    %c0_i32_0 = arith.constant 0 : i32
    %c0_i32_1 = arith.constant 0 : i32
    return %c0_i32, %c0_i32_0 : i32, i32
  }
  func.func @transform_6(%arg0: i32) -> (i32, i32) {
    %c0_i32 = arith.constant 0 : i32
    %c0_i32_0 = arith.constant 0 : i32
    %c0_i32_1 = arith.constant 0 : i32
    return %c0_i32, %c0_i32_0 : i32, i32
  }
  func.func @transform_7(%arg0: i32) -> (i32, i32) {
    %c0_i32 = arith.constant 0 : i32
    %c0_i32_0 = arith.constant 0 : i32
    %c0_i32_1 = arith.constant 0 : i32
    return %c0_i32, %c0_i32_0 : i32, i32
  }
  func.func @transform_8(%arg0: i32) -> (i32, i32) {
    %c0_i32 = arith.constant 0 : i32
    %c0_i32_0 = arith.constant 0 : i32
    return %arg0, %c0_i32 : i32, i32
  }
  func.func @transform_9(%arg0: i32) -> (i32, i32) {
    %c0_i32 = arith.constant 0 : i32
    %c0_i32_0 = arith.constant 0 : i32
    return %arg0, %c0_i32 : i32, i32
  }
}

</mosaic_0001>

<bundles_post_ra>
// kernel: tpu_custom_call.1
= control target key start
LH: loop header
LB: loop body
LE: loop exit
PB: predicated region body
PF: predicated region fallthrough
CT: control target
= control target key end

     0   :  { %16 = vsyncpa [#allocation4], 0  ;;  %s684_s0 = inlined_call_operand.vmem [shape: bf16[2,16], index: 0, kind: input, shape index: {}]   ;;  %s685_s1 = inlined_call_operand.hbm [shape: bf16[2,8,16], index: 1, kind: input, shape index: {}]   ;;  %s686_s2 = inlined_call_operand.hbm [shape: bf16[16,32], index: 2, kind: input, shape index: {}]   ;;  %s687_s3 = inlined_call_operand.hbm [shape: f32[1,32], index: 3, kind: input, shape index: {}]   ;;  %s688_s4 = inlined_call_operand.vmem [shape: bf16[16,32], index: 4, kind: input, shape index: {}]   ;;  %s689_s5 = inlined_call_operand.vmem [shape: f32[1,32], index: 5, kind: input, shape index: {}]   ;;  %s690_s6 = inlined_call_operand.vmem [shape: f32[1,32], index: 6, kind: input, shape index: {}]   ;;  %s691_s7 = inlined_call_operand.<no memory space> [shape: f32[1,1], index: 7, kind: input, shape index: {}]   ;;  %s692_s8 = inlined_call_operand.hbm [shape: f32[2,16], index: 8, kind: output, shape index: {0}]   ;;  %s693_s9 = inlined_call_operand.hbm [shape: f32[2,8], index: 9, kind: output, shape index: {1}]  }
   0x1   :  { %17 = vsyncpa [#allocation7], 0 }
   0x2   :  { %18 = vsyncpa [#allocation5], 0 }
   0x3   :  { %19 = vsyncpa [#allocation11], 0  ;;  %s557_s30 = smov [#allocation6]   ;;  %s558_s11 = smov [#allocation3]  }
   0x4   :  { %s39_s10 = sshll.u32 %s557_s30, 4  ;;  %s27_s12 = sshll.u32 %s558_s11, 4  ;;  %s40_s10 = int_to_ptr.vmem [resolvable:$true] %s39_s10  ;;  %s28_s12 = int_to_ptr.vmem [resolvable:$true] %s27_s12 }
   0x5   :  { %s457_s13 = scalar_lea.vmem %s40_s10, 128  ;;  %p462_p1 = scmp.lt.s32.totalorder %s40_s10, %s40_s10 }
   0x6   :  { %p458_p0 = scmp.ne.s32.totalorder %s40_s10, %s457_s13  ;;  %p463_p2 = scmp.lt.s32.totalorder %s457_s13, %s457_s13 }
   0x8   :  { %p464_p3 = por %p463_p2, %p462_p1 }
   0xa   :  { %p465_p4 = pnand %p464_p3, %p458_p0 }
   0xc   :  { %468 = shalt.err (!%p465_p4)
}
   0xd   :  { %s559_s14 = smov 64   ;;  %s560_s15 = smov 4  }
   0xe   :  { %45 = dma.hbm_to_vmem [thread:$0]  %s686_s2, 128, %s40_s10, [#allocation7], %s559_s14, %s559_s14, %s560_s15  }
   0xf   :  { %s477_s18 = scalar_lea.vmem %s28_s12, 128  ;;  %p482_p6 = scmp.lt.s32.totalorder %s28_s12, %s28_s12 }
  0x10   :  { %p478_p5 = scmp.ne.s32.totalorder %s28_s12, %s477_s18  ;;  %p483_p7 = scmp.lt.s32.totalorder %s477_s18, %s477_s18 }
  0x12   :  { %p484_p8 = por %p483_p7, %p482_p6 }
  0x14   :  { %p485_p9 = pnand %p484_p8, %p478_p5 }
  0x16   :  { %488 = shalt.err (!%p485_p9)
}
  0x17   :  { %33 = dma.hbm_to_vmem [thread:$0]  %s685_s1, 128, %s28_s12, [#allocation4], %s559_s14, %s559_s14, %s560_s15  }
  0x18   :  { %s561_s21 = smov [#allocation8]  }
  0x19   :  { %s52_s22 = sshll.u32 %s561_s21, 4  ;;  %s53_s22 = int_to_ptr.vmem [resolvable:$true] %s52_s22 }
  0x1a   :  { %s497_s23 = scalar_lea.vmem %s53_s22, 16  ;;  %s501_s24 = scalar_lea.vmem %s53_s22, 32 }
  0x1b   :  { %p498_p10 = scmp.ne.s32.totalorder %s53_s22, %s497_s23  ;;  %p502_p11 = scmp.lt.s32.totalorder %s53_s22, %s53_s22 }
  0x1c   :  { %p503_p12 = scmp.lt.s32.totalorder %s501_s24, %s497_s23 }
  0x1e   :  { %p504_p13 = por %p503_p12, %p502_p11 }
  0x20   :  { %p505_p0 = pnand %p504_p13, %p498_p10 }
  0x22   :  { %508 = shalt.err (!%p505_p0)
}
  0x23   :  { %55 = dma.hbm_to_vmem [thread:$0]  %s687_s3, 16, %s53_s22, [#allocation7]  }
  0x24   :  { %549 = dma.done.wait [#allocation4], 128  }
  0x25   :  { %550 = vsyncadd [#allocation4], 4294967168 }
  0x26   :  { %551 = dma.done.wait [#allocation7], 144  }
  0x27   :  { %552 = vsyncadd [#allocation7], 4294967152  ;;  %v562_v0 = vmov 0.0   ;;  %vm563_vm0 = vmmov 0   ;;  %v437_v1 = vld [vmem:[#allocation6] sm:$0xff]   ;;  %v438_v2 = vld [vmem:[%s688_s4] sm:$0xff]   ;;  %v202_v7 = vlaneseq  ;;  %v252_v41 = vstv %s691_s7 }
  0x28   :  { %412 = vmatprep.subr.bf16.mxu0 %v562_v0  ;;  %418 = vmatprep.subr.bf16.mxu1 %v562_v0  ;;  %v74_v3 = vld [vmem:[%s684_s0] sm:$0x1]  ;;  %vm94_vm1 = vcmask 130048   ;;  %v564_v5 = vmov 1966171168   ;;  %vm244_vm2 = vcmask 261120  }
  0x29   :  { %414 = vmatprep.mubr.msk.bf16.mxu0 %vm563_vm0, %v562_v0  ;;  %420 = vmatprep.mubr.msk.bf16.mxu1 %vm563_vm0, %v562_v0  ;;  %v633_v4 = vld [vmem:[#allocation3] sm:$0xff]   ;;  %v200_v6 = vunpack.c.l.s4 %v564_v5  ;;  %v638_v9 = vshrl.u32 %v202_v7, 7  ;;  %v400_v10 = vld [vmem:[#allocation8] ss:$0 sm:$0xff]  ;;  %v258_v40 = vand.u32 127, %v202_v7  ;;  %vm267_vm3 = vcmask 1041409  }
  0x2a   :  { %413 = vmatpush3.bf16.msra.mxu0 %v437_v1  ;;  %419 = vmatpush3.bf16.msra.mxu1 %v438_v2  ;;  %v404_v15 = vld [vmem:[%s689_s5] ss:$0 sm:$0xff]  ;;  %vm270_vm4 = vcmask 58368   ;;  %v565_v51 = vmov 0  }
  0x2b   :  { %v201_v8 = vunpack.c.0.s8 %v200_v6  ;;  %v645_v18 = vsub.s32 0, %v638_v9  ;;  %v407_v32 = vld [vmem:[%s690_s6] ss:$0 sm:$0xff]  ;;  %v656_v43 = vsub.s32 %v258_v40, %v638_v9  ;;  %436 = vset.pattern.permute.xlu0 %v565_v51  ;;  %435 = vset.pattern.permute.xlu1 %v565_v51  ;;  %v281_v52 = vsub.s32 1, %v638_v9  ;;  %s566_s6 = smov [#allocation10]  }
  0x2c   :  { %s386_s7 = sshll.u32 %s566_s6, 4  ;;  %s387_s7 = int_to_ptr.vmem [resolvable:$true] %s386_s7 }
  0x2d   :  { %415 = vmatmul.mubr.msk.bf16.vlgmr.msra.gmra.mxu0 %vm94_vm1, %v74_v3  ;;  %421 = vmatmul.mubr.msk.bf16.vlgmr.msra.gmra.mxu1 %vm94_vm1, %v633_v4  ;;  %v204_v11 = vsub.s32 %v201_v8, %v638_v9  ;;  %s509_s10 = scalar_lea.vmem %s387_s7, 32  ;;  %p514_p2 = scmp.lt.s32.totalorder %s387_s7, %s387_s7 }
  0x2e   :  { %p510_p1 = scmp.ne.s32.totalorder %s387_s7, %s509_s10  ;;  %p515_p3 = scmp.lt.s32.totalorder %s509_s10, %s509_s10 }
  0x30   :  { %p516_p4 = por %p515_p3, %p514_p2 }
  0x32   :  { %p517_p5 = pnand %p516_p4, %p510_p1 }
  0xed   :  { %v132_v12 = vpop.f32.mrf.mxu0  ;;  %v191_v14 = vpop.f32.mrf.mxu1 }
  0xee   :  { %v133_v13 = vadd.f32 %v400_v10, %v132_v12  ;;  %v192_v23 = vadd.f32 %v404_v15, %v191_v14  ;;  %v77_v12 = vunpack.c.l.bf16 %v633_v4 }
  0xef   :  { %v416_v16 = vpop.f32.mrf.mxu0  ;;  %v422_v19 = vpop.f32.mrf.mxu1 }
  0xf0   :  { %v205_v17 = vrot.slane %v133_v13, %v204_v11 }
  0xf1   :  { %v135_v20 = vpop.f32.mrf.mxu0  ;;  %v194_v24 = vpop.f32.mrf.mxu1 }
  0xf2   :  { %v206_v21 = vcombine.high %v205_v17, %v205_v17  ;;  %v213_v22 = vrot.slane %v205_v17, %v204_v11  ;;  %v195_v30 = vadd.f32 %v404_v15, %v194_v24  ;;  %v78_v15 = vunpack.c.h.bf16 %v633_v4 }
  0xf3   :  { %v417_v25 = vpop.f32.mrf.mxu0  ;;  %v423_v28 = vpop.f32.mrf.mxu1 }
  0xf4   :  { %v224_v26 = vrot.slane %v213_v22, %v645_v18  ;;  %v220_v27 = vrot.slane %v206_v21, %v204_v11 }
  0xf6   :  { %v231_v29 = vadd.f32 %v224_v26, %v192_v23  ;;  %v228_v31 = vrot.slane %v220_v27, %v645_v18 }
  0xf8   :  { %v233_v33 = vmax.f32 %v231_v29, 0.0  ;;  %v232_v34 = vadd.f32 %v228_v31, %v195_v30 }
  0xfa   :  { %v234_v35 = vmax.f32 %v232_v34, 0.0  ;;  %v242_v36 = vmul.f32 %v407_v32, %v233_v33 }
  0xfc   :  { %v245_v37 = vsel %vm244_vm2, %v242_v36, 0.0  ;;  %v243_v38 = vmul.f32 %v407_v32, %v234_v35 }
  0xfd   :  { %246 = vadd.xlane.f32.xlu0 %v245_v37 }
  0xfe   :  { %v248_v39 = vsel %vm244_vm2, %v243_v38, 0.0 }
 0x101   :  { %249 = vadd.xlane.f32.xlu0 %v248_v39 }
 0x186   :  { %v247_v42 = vpop.xlane.xlu0 %246 }
 0x187   :  { %v253_v44 = vadd.f32 %v252_v41, %v247_v42 }
 0x189   :  { %v262_v47 = vrot.slane %v253_v44, %v656_v43 }
 0x18a   :  { %v250_v45 = vpop.xlane.xlu0 %249 }
 0x18b   :  { %v254_v46 = vadd.f32 %v252_v41, %v250_v45 }
 0x18d   :  { %v266_v48 = vrot.slane %v254_v46, %v656_v43 }
 0x18f   :  { %v268_v49 = vsel %vm267_vm3, %v266_v48, %v262_v47 }
 0x190   :  { %v271_v50 = vsel %vm270_vm4, %v268_v49, -inf }
 0x191   :  { %272 = vmax.xlane.f32.xlu1 %v271_v50 }
 0x21a   :  { %v273_v53 = vpop.xlane.xlu1 %272 }
 0x21b   :  { %v278_v54 = vrot.slane %v273_v53, %v645_v18  ;;  %v282_v55 = vrot.slane %v273_v53, %v281_v52 }
 0x21d   :  { %v285_v56 = vsub.f32 %v253_v44, %v278_v54  ;;  %v286_v57 = vsub.f32 %v254_v46, %v282_v55 }
 0x21f   :  { %v287_v58 = vmul.f32 1.442695, %v285_v56  ;;  %v289_v59 = vmul.f32 1.442695, %v286_v57 }
 0x221   :  { %441 = vpow2.f32 %v287_v58 }
 0x222   :  { %443 = vpow2.f32 %v289_v59 }
 0x22e   :  { %v442_v60 = vpop.eup %441 }
 0x22f   :  { %v444_v61 = vpop.eup %443  ;;  %294 = vperm.xlu1 %435, %v442_v60  }
 0x230   :  { %297 = vperm.xlu0 %436, %v444_v61  }
 0x2aa   :  { %v295_v62 = vpop.permute.xlu1 %294 }
 0x2ab   :  { %v298_v63 = vpop.permute.xlu0 %297  ;;  %v302_v0 = vrot.slane %v295_v62, %v656_v43 }
 0x2ac   :  { %v306_v1 = vrot.slane %v298_v63, %v656_v43 }
 0x2ae   :  { %v307_v2 = vsel %vm267_vm3, %v306_v1, %v302_v0 }
 0x2af   :  { %v309_v3 = vsel %vm270_vm4, %v307_v2, 0.0 }
 0x2b0   :  { %310 = vadd.xlane.f32.xlu1 %v309_v3 }
 0x339   :  { %v311_v5 = vpop.xlane.xlu1 %310 }
 0x33a   :  { %v316_v6 = vrot.slane %v311_v5, %v645_v18  ;;  %v320_v7 = vrot.slane %v311_v5, %v281_v52 }
 0x33c   :  { %445 = vrcp.f32 %v316_v6 }
 0x33d   :  { %447 = vrcp.f32 %v320_v7 }
 0x349   :  { %v446_v8 = vpop.eup %445 }
 0x34a   :  { %v324_v9 = vmul.f32 %v446_v8, %v442_v60  ;;  %v448_v10 = vpop.eup %447 }
 0x34b   :  { %v326_v11 = vmul.f32 %v448_v10, %v444_v61 }
 0x34c   :  { %330 = vperm.xlu0 %436, %v324_v9  }
 0x350   :  { %333 = vperm.xlu0 %436, %v326_v11  }
 0x3c7   :  { %v331_v13 = vpop.permute.xlu0 %330 }
 0x3c8   :  { %v348_v14 = vmul.f32 %v331_v13, %v77_v12  ;;  %v338_v19 = vrot.slane %v331_v13, %v656_v43 }
 0x3ca   :  { %v350_v16 = vsel %vm94_vm1, %v348_v14, 0.0 }
 0x3cb   :  { %v351_v17 = vrot.slane %v350_v16, 4  ;;  %v334_v18 = vpop.permute.xlu0 %333 }
 0x3cc   :  { %v342_v20 = vrot.slane %v334_v18, %v656_v43  ;;  %v349_v21 = vmul.f32 %v334_v18, %v78_v15 }
 0x3cd   :  { %v352_v22 = vadd.f32 %v351_v17, %v350_v16 }
 0x3ce   :  { %v357_v23 = vsel %vm94_vm1, %v349_v21, 0.0  ;;  %v343_v24 = vsel %vm267_vm3, %v342_v20, %v338_v19 }
 0x3cf   :  { %v353_v25 = vrot.slane %v352_v22, 2  ;;  %v358_v26 = vrot.slane %v357_v23, 4  ;;  %345 = vst.msk [vmem:[#allocation10] sm:$0x3] %vm270_vm4, %v343_v24 }
 0x3d0   :  { %520 = shalt.err (!%p517_p5)
}
 0x3d1   :  { %389 = dma.vmem_to_hbm [thread:$0]  %s387_s7, 32, %s693_s9, [#allocation11]   ;;  %v354_v4 = vadd.f32 %v353_v25, %v352_v22  ;;  %v359_v27 = vadd.f32 %v358_v26, %v357_v23  ;;  %vm368_vm5 = vcmask 123904  }
 0x3d2   :  { %s567_s13 = smov [#allocation9]  }
 0x3d3   :  { %v360_v28 = vrot.slane %v359_v27, 2  ;;  %v355_v29 = vrot.slane %v354_v4, 1  ;;  %s376_s14 = sshll.u32 %s567_s13, 4  ;;  %s377_s14 = int_to_ptr.vmem [resolvable:$true] %s376_s14 }
 0x3d4   :  { %s529_s15 = scalar_lea.vmem %s377_s14, 32  ;;  %p534_p7 = scmp.lt.s32.totalorder %s377_s14, %s377_s14 }
 0x3d5   :  { %v361_v30 = vadd.f32 %v360_v28, %v359_v27  ;;  %v356_v33 = vadd.f32 %v355_v29, %v354_v4  ;;  %p530_p6 = scmp.ne.s32.totalorder %s377_s14, %s529_s15  ;;  %p535_p8 = scmp.lt.s32.totalorder %s529_s15, %s529_s15 }
 0x3d7   :  { %v362_v31 = vrot.slane %v361_v30, 1  ;;  %p536_p9 = por %p535_p8, %p534_p7 }
 0x3d9   :  { %v363_v32 = vadd.f32 %v362_v31, %v361_v30  ;;  %p537_p10 = pnand %p536_p9, %p530_p6 }
 0x3db   :  { %v366_v34 = vsel %vm267_vm3, %v363_v32, %v356_v33 }
 0x3dc   :  { %369 = vst.msk [vmem:[#allocation9] sm:$0x3] %vm368_vm5, %v366_v34 }
 0x3dd   :  { %540 = shalt.err (!%p537_p10)
}
 0x3de   :  { %379 = dma.vmem_to_hbm [thread:$0]  %s377_s14, 32, %s692_s8, [#allocation5]  }
 0x3df   :  { %553 = dma.done.wait [#allocation5], 32  }
 0x3e0   :  { %554 = vsyncadd [#allocation5], 4294967264 }
 0x3e1   :  { %555 = dma.done.wait [#allocation11], 32  }
 0x3e2   :  { %556 = vsyncadd [#allocation11], 4294967264 }
 0x3e3   :  { %396 = vsyncpa [#allocation4], 1 }
 0x3e4   :  { %397 = vsyncpa [#allocation7], 1 }
 0x3e5   :  { %398 = vsyncpa [#allocation5], 1 }
 0x3e6   :  { %399 = vsyncpa [#allocation11], 1 }

</bundles_post_ra>
